<compile_context>
chip_gen: v7x
topology: tpu7x:2x2x1
jax: 0.10.0
libtpu: 0.0.40
codegen_flags: <defaults>
</compile_context>

<pallas_src>
import functools
import math

import jax
import jax.numpy as jnp
from jax.experimental import pallas as pl
from jax.experimental.pallas import tpu as pltpu


# --------------------------------------------------------------------------
# small helpers
# --------------------------------------------------------------------------

def _vmem_capacity():
    try:
        return int(pltpu.get_tpu_info().vmem_capacity_bytes)
    except Exception:
        return 64 * 1024 * 1024


_VMEM_CAP = _vmem_capacity()
_VMEM_LIMIT = min(100 * 1024 * 1024, (_VMEM_CAP * 3) // 4)


def _cparams(*sems):
    return pltpu.CompilerParams(dimension_semantics=tuple(sems),
                                vmem_limit_bytes=_VMEM_LIMIT)


def _divisor_tile(n, target, multiple=1):
    """Largest divisor of n that is <= target and a multiple of `multiple`; n itself if none."""
    target = int(target)
    if n <= target:
        return n
    best = 0
    for t in range(multiple, target + 1, multiple):
        if n % t == 0:
            best = t
    return best if best else n


def _row_tile(n, target):
    """Sublane-major row tile.  Prefers an exact divisor (no padding); else pads to `target`."""
    if n <= target:
        return n, n
    best = 0
    for t in range(8, target + 1, 8):
        if n % t == 0:
            best = t
    if best >= target // 2:
        return best, n
    # TODO(synk): masked last tile instead of HBM pad + slice for awkward row counts.
    n_pad = pl.cdiv(n, target) * target
    return target, n_pad


def _matmul_tiles(M, K, N, *, n_weights=1, x_bytes=2, out_bytes=2, row_target=512):
    """Row tile + output-column tile; keeps the (double-buffered) weight resident when it fits."""
    tm, Mp = _row_tile(M, row_target)
    budget = int(_VMEM_LIMIT * 0.8)

    def fits(tn):
        w = 2 * n_weights * K * tn * 2          # double-buffered bf16 weight(s)
        xb = 2 * tm * K * x_bytes
        ob = 2 * tm * tn * out_bytes
        return (w + xb + ob) <= budget

    # TODO(synk): mark constant-index weight blocks pipeline_mode=pl.Buffered(1) to drop the
    # double buffer, and add K-axis tiling (f32 accumulator scratch) for weights that cannot
    # fit VMEM even with N tiling.
    if fits(N):
        return tm, Mp, N
    for t in (2048, 1024, 512, 256, 128):
        if N % t == 0 and fits(t):
            return tm, Mp, t
    for t in (128, 256, 512, 1024, 2048):       # smallest lane-aligned divisor, best effort
        if N % t == 0:
            return tm, Mp, t
    return tm, Mp, N


# --------------------------------------------------------------------------
# GroupNorm statistics (tiled over the spatial axis)
# --------------------------------------------------------------------------

def _gn_stats_kernel(x_ref, m_ref, mt_ref, mean_ref, rstd_ref, s1_ref, s2_ref,
                     *, eps, inv_count):
    t = pl.program_id(1)

    @pl.when(t == 0)
    def _():
        s1_ref[...] = jnp.zeros_like(s1_ref)
        s2_ref[...] = jnp.zeros_like(s2_ref)

    x = x_ref[0].astype(jnp.float32)                      # (ts, C)
    s1_ref[...] += jnp.sum(x, axis=0, keepdims=True)
    s2_ref[...] += jnp.sum(x * x, axis=0, keepdims=True)

    @pl.when(t == pl.num_programs(1) - 1)
    def _():
        s1g = jnp.dot(s1_ref[...], m_ref[...], preferred_element_type=jnp.float32)
        s2g = jnp.dot(s2_ref[...], m_ref[...], preferred_element_type=jnp.float32)
        mean_g = s1g * inv_count
        var_g = jnp.maximum(s2g * inv_count - mean_g * mean_g, 0.0)   # clamp: no NaN
        rstd_g = jax.lax.rsqrt(var_g + eps)
        mean_ref[0] = jnp.dot(mean_g, mt_ref[...], preferred_element_type=jnp.float32)
        rstd_ref[0] = jnp.dot(rstd_g, mt_ref[...], preferred_element_type=jnp.float32)


def gn_stats(x_nsc, groups, eps):
    """Per-sample GroupNorm statistics, broadcast per-channel: (N, 1, C) mean / rstd (f32)."""
    N, S, C = x_nsc.shape
    cg = C // groups
    ts, Sp = _row_tile(S, 1024)
    xP = jnp.pad(x_nsc, ((0, 0), (0, Sp - S), (0, 0))) if Sp != S else x_nsc
    onehot = (jnp.arange(C)[:, None] // cg == jnp.arange(groups)[None, :]).astype(jnp.float32)
    kern = functools.partial(_gn_stats_kernel, eps=eps, inv_count=1.0 / float(S * cg))
    mean, rstd = pl.pallas_call(
        kern,
        out_shape=(jax.ShapeDtypeStruct((N, 1, C), jnp.float32),
                   jax.ShapeDtypeStruct((N, 1, C), jnp.float32)),
        grid=(N, Sp // ts),
        in_specs=[pl.BlockSpec((1, ts, C), lambda i, t: (i, t, 0)),
                  pl.BlockSpec((C, groups), lambda i, t: (0, 0)),
                  pl.BlockSpec((groups, C), lambda i, t: (0, 0))],
        out_specs=(pl.BlockSpec((1, 1, C), lambda i, t: (i, 0, 0)),
                   pl.BlockSpec((1, 1, C), lambda i, t: (i, 0, 0))),
        scratch_shapes=[pltpu.VMEM((1, C), jnp.float32),
                        pltpu.VMEM((1, C), jnp.float32)],
        compiler_params=_cparams("parallel", "arbitrary"),
    )(xP, onehot, onehot.T)
    return mean, rstd


# --------------------------------------------------------------------------
# generic fused matmul (bf16 x bf16 -> f32), weight-outer grid
# --------------------------------------------------------------------------

def _matmul_kernel(x_ref, w_ref, *rest, prologue, has_bias, has_res, scale, ln_eps):
    o_ref = rest[-1]
    idx = 0
    b_ref = g_ref = be_ref = res_ref = None
    if has_bias:
        b_ref = rest[idx]; idx += 1
    if prologue == "ln":
        g_ref, be_ref = rest[idx], rest[idx + 1]; idx += 2
    if has_res:
        res_ref = rest[idx]; idx += 1

    if prologue is None:
        xb = x_ref[...].astype(jnp.bfloat16)               # no f32 round-trip
    else:
        x = x_ref[...].astype(jnp.float32)
        if prologue == "silu":
            x = x * jax.nn.sigmoid(x)
        elif prologue == "ln":
            mu = jnp.mean(x, axis=-1, keepdims=True)
            var = jnp.maximum(jnp.mean(x * x, axis=-1, keepdims=True) - mu * mu, 0.0)
            x = (x - mu) * jax.lax.rsqrt(var + ln_eps) * g_ref[...] + be_ref[...]
        xb = x.astype(jnp.bfloat16)

    acc = jnp.dot(xb, w_ref[...], preferred_element_type=jnp.float32)
    if has_bias:
        acc = acc + b_ref[...]
    if has_res:
        acc = acc + res_ref[...].astype(jnp.float32)
    if scale != 1.0:
        acc = acc * scale
    o_ref[...] = acc.astype(o_ref.dtype)


def matmul(x, w, b=None, *, prologue=None, ln_gamma=None, ln_beta=None, ln_eps=1e-5,
           residual=None, scale=1.0):
    M, K = x.shape
    N = w.shape[1]
    xb = jnp.dtype(x.dtype).itemsize
    tm, Mp, tn = _matmul_tiles(M, K, N, x_bytes=xb, out_bytes=xb)
    pad = Mp - M
    xP = jnp.pad(x, ((0, pad), (0, 0))) if pad else x
    resP = None
    if residual is not None:
        resP = jnp.pad(residual, ((0, pad), (0, 0))) if pad else residual

    # grid = (column tiles OUTER, row tiles INNER): the weight block index depends only on the
    # outer axis -> each (K, tn) weight slab is DMA'd exactly once.
    args = [xP, w.astype(jnp.bfloat16)]
    in_specs = [pl.BlockSpec((tm, K), lambda j, i: (i, 0)),
                pl.BlockSpec((K, tn), lambda j, i: (0, j))]
    if b is not None:
        args.append(jnp.asarray(b, jnp.float32).reshape(1, N))
        in_specs.append(pl.BlockSpec((1, tn), lambda j, i: (0, j)))
    if prologue == "ln":
        args += [jnp.asarray(ln_gamma, jnp.float32).reshape(1, K),
                 jnp.asarray(ln_beta, jnp.float32).reshape(1, K)]
        in_specs += [pl.BlockSpec((1, K), lambda j, i: (0, 0)),
                     pl.BlockSpec((1, K), lambda j, i: (0, 0))]
    if resP is not None:
        args.append(resP)
        in_specs.append(pl.BlockSpec((tm, tn), lambda j, i: (i, j)))

    kern = functools.partial(_matmul_kernel, prologue=prologue, has_bias=b is not None,
                             has_res=residual is not None, scale=scale, ln_eps=ln_eps)
    out = pl.pallas_call(
        kern,
        out_shape=jax.ShapeDtypeStruct((Mp, N), x.dtype),
        grid=(N // tn, Mp // tm),
        in_specs=in_specs,
        out_specs=pl.BlockSpec((tm, tn), lambda j, i: (i, j)),
        compiler_params=_cparams("arbitrary", "parallel"),
    )(*args)
    return out[:M] if pad else out


def _geglu_kernel(x_ref, wh_ref, wg_ref, bh_ref, bg_ref, g_ref, be_ref, o_ref, *, ln_eps):
    x = x_ref[...].astype(jnp.float32)
    mu = jnp.mean(x, axis=-1, keepdims=True)
    var = jnp.maximum(jnp.mean(x * x, axis=-1, keepdims=True) - mu * mu, 0.0)
    xn = (x - mu) * jax.lax.rsqrt(var + ln_eps) * g_ref[...] + be_ref[...]
    xb = xn.astype(jnp.bfloat16)
    h = jnp.dot(xb, wh_ref[...], preferred_element_type=jnp.float32) + bh_ref[...]
    g = jnp.dot(xb, wg_ref[...], preferred_element_type=jnp.float32) + bg_ref[...]
    o_ref[...] = (h * jax.nn.gelu(g, approximate=False)).astype(o_ref.dtype)


def geglu_matmul(x, wh, wg, bh, bg, *, ln_gamma, ln_beta, ln_eps=1e-5):
    """LayerNorm -> GEGLU(Linear) fused in one kernel (diffusers FF first half)."""
    M, K = x.shape
    N = wh.shape[1]
    xb = jnp.dtype(x.dtype).itemsize
    tm, Mp, tn = _matmul_tiles(M, K, N, n_weights=2, x_bytes=xb, out_bytes=xb)
    pad = Mp - M
    xP = jnp.pad(x, ((0, pad), (0, 0))) if pad else x
    out = pl.pallas_call(
        functools.partial(_geglu_kernel, ln_eps=ln_eps),
        out_shape=jax.ShapeDtypeStruct((Mp, N), x.dtype),
        grid=(N // tn, Mp // tm),
        in_specs=[pl.BlockSpec((tm, K), lambda j, i: (i, 0)),
                  pl.BlockSpec((K, tn), lambda j, i: (0, j)),
                  pl.BlockSpec((K, tn), lambda j, i: (0, j)),
                  pl.BlockSpec((1, tn), lambda j, i: (0, j)),
                  pl.BlockSpec((1, tn), lambda j, i: (0, j)),
                  pl.BlockSpec((1, K), lambda j, i: (0, 0)),
                  pl.BlockSpec((1, K), lambda j, i: (0, 0))],
        out_specs=pl.BlockSpec((tm, tn), lambda j, i: (i, j)),
        compiler_params=_cparams("arbitrary", "parallel"),
    )(xP, wh.astype(jnp.bfloat16), wg.astype(jnp.bfloat16),
      jnp.asarray(bh, jnp.float32).reshape(1, N), jnp.asarray(bg, jnp.float32).reshape(1, N),
      jnp.asarray(ln_gamma, jnp.float32).reshape(1, K),
      jnp.asarray(ln_beta, jnp.float32).reshape(1, K))
    return out[:M] if pad else out


# --------------------------------------------------------------------------
# GroupNorm -> 1x1-linear fusion (Transformer2DModel norm + proj_in)
# --------------------------------------------------------------------------

def _gn_linear_kernel(x_ref, mean_ref, rstd_ref, g_ref, b_ref, w_ref, wb_ref, o_ref):
    x = x_ref[0].astype(jnp.float32)
    xn = (x - mean_ref[0]) * rstd_ref[0] * g_ref[...] + b_ref[...]
    o_ref[0] = (jnp.dot(xn.astype(jnp.bfloat16), w_ref[...],
                        preferred_element_type=jnp.float32) + wb_ref[...]).astype(o_ref.dtype)


def gn_linear(x_nsc, mean, rstd, gamma, beta, w, b):
    N, S, C = x_nsc.shape
    Co = w.shape[-1]
    ts, Sp = _row_tile(S, 1024)
    xP = jnp.pad(x_nsc, ((0, 0), (0, Sp - S), (0, 0))) if Sp != S else x_nsc
    out = pl.pallas_call(
        _gn_linear_kernel,
        out_shape=jax.ShapeDtypeStruct((N, Sp, Co), x_nsc.dtype),
        grid=(N, Sp // ts),
        in_specs=[pl.BlockSpec((1, ts, C), lambda i, t: (i, t, 0)),
                  pl.BlockSpec((1, 1, C), lambda i, t: (i, 0, 0)),
                  pl.BlockSpec((1, 1, C), lambda i, t: (i, 0, 0)),
                  pl.BlockSpec((1, C), lambda i, t: (0, 0)),
                  pl.BlockSpec((1, C), lambda i, t: (0, 0)),
                  pl.BlockSpec((C, Co), lambda i, t: (0, 0)),
                  pl.BlockSpec((1, Co), lambda i, t: (0, 0))],
        out_specs=pl.BlockSpec((1, ts, Co), lambda i, t: (i, t, 0)),
        compiler_params=_cparams("parallel", "parallel"),
    )(xP, mean, rstd,
      jnp.asarray(gamma, jnp.float32).reshape(1, C), jnp.asarray(beta, jnp.float32).reshape(1, C),
      w.astype(jnp.bfloat16), jnp.asarray(b, jnp.float32).reshape(1, Co))
    return out[:, :S] if Sp != S else out


# --------------------------------------------------------------------------
# fused 3x3 conv: row-tiled with 1-row halos, in-VMEM zero padding, optional 2x upsample,
# GN+SiLU prologue, bias / temb / shortcut / residual / scale epilogue
# --------------------------------------------------------------------------

def _conv3x3_kernel(*refs, thi, W, Cin, Cout, has_gn, act, has_temb, has_res,
                    has_shortcut, scale, upsample_rows):
    idx = 0
    x_ref = refs[idx]; idx += 1
    halo_ref = refs[idx]; idx += 1
    mean_ref = rstd_ref = g_ref = b_ref = None
    if has_gn:
        mean_ref, rstd_ref, g_ref, b_ref = refs[idx:idx + 4]; idx += 4
    w_ref, bias_ref = refs[idx], refs[idx + 1]; idx += 2
    temb_ref = res_ref = scw_ref = scb_ref = None
    if has_temb:
        temb_ref = refs[idx]; idx += 1
    if has_res:
        res_ref = refs[idx]; idx += 1
    if has_shortcut:
        scw_ref, scb_ref = refs[idx], refs[idx + 1]; idx += 2
    o_ref = refs[-1]

    r = pl.program_id(1)
    last_r = pl.num_programs(1) - 1
    compute_f32 = has_gn or (act is not None)
    cdt = jnp.float32 if compute_f32 else jnp.bfloat16

    def norm_act(t):
        if has_gn:
            t = (t - mean_ref[0]) * rstd_ref[0] * g_ref[...] + b_ref[...]
        if act == "silu":
            t = t * jax.nn.sigmoid(t)
        return t

    x = norm_act(x_ref[0].astype(cdt))                         # (thi, W, Cin)
    halo = halo_ref[0].astype(cdt)                             # (2, W, Cin)
    # halo rows at the image boundary are the conv zero-padding: keep them zero after GN/act
    top = norm_act(halo[0:1]) * (r > 0).astype(cdt)
    bot = norm_act(halo[1:2]) * (r < last_r).astype(cdt)
    slab = jnp.concatenate([top, x, bot], axis=0)              # (thi + 2, W, Cin)

    if upsample_rows:      # nearest 2x along rows, in VMEM (columns pre-doubled by the wrapper)
        rep = jnp.broadcast_to(slab[:, None], (thi + 2, 2, W, Cin)).reshape(2 * thi + 4, W, Cin)
        slab = rep[1:2 * thi + 3]
        Hi = 2 * thi
    else:
        Hi = thi

    zcol = jnp.zeros((Hi + 2, 1, Cin), slab.dtype)
    slab = jnp.concatenate([zcol, slab, zcol], axis=1)         # (Hi + 2, W + 2, Cin)
    xb = slab.astype(jnp.bfloat16)

    acc = jnp.zeros((Hi * W, Cout), jnp.float32)
    for kw in range(3):
        # one horizontally-shifted slab per kw (3 copies, not 9); kh shifts are aligned
        # flat row slices that stay on the cheap path when W % 8 == 0.
        xs = xb[:, kw:kw + W, :].reshape((Hi + 2) * W, Cin)
        for kh in range(3):
            tap = xs[kh * W:(kh + Hi) * W]
            acc = acc + jnp.dot(tap, w_ref[kh * 3 + kw], preferred_element_type=jnp.float32)

    acc = acc + bias_ref[...]
    if has_temb:
        acc = acc + temb_ref[0]
    if has_res:
        rr = res_ref[0].reshape(thi * W, -1)
        if has_shortcut:
            rv = jnp.dot(rr.astype(jnp.bfloat16), scw_ref[...],
                         preferred_element_type=jnp.float32) + scb_ref[...]
        else:
            rv = rr.astype(jnp.float32)
        acc = acc + rv
    if scale != 1.0:
        acc = acc * scale
    o_ref[0] = acc.reshape(Hi, W, Cout).astype(o_ref.dtype)


def conv3x3(x, w9, bias, *, gn=None, act=None, temb_add=None, residual=None, shortcut=None,
            scale=1.0, upsample2x=False):
    """3x3 conv (pad 1).  gn=(mean,rstd,gamma,beta) fuses GroupNorm+act; upsample2x fuses a
    2x nearest upsample (cols doubled in the wrapper, rows doubled inside the kernel)."""
    N, H, W0, Cin = x.shape
    Cout = w9.shape[-1]
    if upsample2x:
        assert gn is None and residual is None and temb_add is None
        # TODO(synk): fold the column repeat into the kernel tap indexing as well.
        x = jnp.repeat(x, 2, axis=2)
        W = 2 * W0
    else:
        W = W0

    bytes_per_row = (W + 2) * (Cin * 8 + Cout * 6) * (2 if upsample2x else 1) + 64
    max_rows = max(1, int((_VMEM_LIMIT // 3) // bytes_per_row))
    thi = _divisor_tile(H, min(H, max_rows), 1)
    R = H // thi
    Hi = 2 * thi if upsample2x else thi
    Hout = R * Hi

    # halo rows: row r*thi - 1 (top) and row (r+1)*thi (bottom); zero at the image edges
    zrow = jnp.zeros((N, 1, W, Cin), x.dtype)
    if R > 1:
        top = jnp.concatenate([zrow, x[:, thi - 1:H - 1:thi]], axis=1)
        bot = jnp.concatenate([x[:, thi:H:thi], zrow], axis=1)
    else:
        top, bot = zrow, zrow
    halos = jnp.stack([top, bot], axis=2).reshape(N, 2 * R, W, Cin)

    args = [x, halos]
    in_specs = [pl.BlockSpec((1, thi, W, Cin), lambda i, r: (i, r, 0, 0)),
                pl.BlockSpec((1, 2, W, Cin), lambda i, r: (i, r, 0, 0))]
    if gn is not None:
        mean, rstd, gamma, beta = gn
        args += [mean, rstd,
                 jnp.asarray(gamma, jnp.float32).reshape(1, Cin),
                 jnp.asarray(beta, jnp.float32).reshape(1, Cin)]
        in_specs += [pl.BlockSpec((1, 1, Cin), lambda i, r: (i, 0, 0)),
                     pl.BlockSpec((1, 1, Cin), lambda i, r: (i, 0, 0)),
                     pl.BlockSpec((1, Cin), lambda i, r: (0, 0)),
                     pl.BlockSpec((1, Cin), lambda i, r: (0, 0))]
    args += [w9.astype(jnp.bfloat16), jnp.asarray(bias, jnp.float32).reshape(1, Cout)]
    in_specs += [pl.BlockSpec((9, Cin, Cout), lambda i, r: (0, 0, 0)),
                 pl.BlockSpec((1, Cout), lambda i, r: (0, 0))]
    if temb_add is not None:
        args.append(jnp.asarray(temb_add, jnp.float32).reshape(N, 1, Cout))
        in_specs.append(pl.BlockSpec((1, 1, Cout), lambda i, r: (i, 0, 0)))
    if residual is not None:
        Cres = residual.shape[-1]
        args.append(residual)
        in_specs.append(pl.BlockSpec((1, thi, W, Cres), lambda i, r: (i, r, 0, 0)))
        if shortcut is not None:
            scw, scb = shortcut
            args += [scw.astype(jnp.bfloat16), jnp.asarray(scb, jnp.float32).reshape(1, Cout)]
            in_specs += [pl.BlockSpec((Cres, Cout), lambda i, r: (0, 0)),
                         pl.BlockSpec((1, Cout), lambda i, r: (0, 0))]

    kern = functools.partial(_conv3x3_kernel, thi=thi, W=W, Cin=Cin, Cout=Cout,
                             has_gn=gn is not None, act=act, has_temb=temb_add is not None,
                             has_res=residual is not None, has_shortcut=shortcut is not None,
                             scale=scale, upsample_rows=upsample2x)
    return pl.pallas_call(
        kern,
        out_shape=jax.ShapeDtypeStruct((N, Hout, W, Cout), x.dtype),
        grid=(N, R),
        in_specs=in_specs,
        out_specs=pl.BlockSpec((1, Hi, W, Cout), lambda i, r: (i, r, 0, 0)),
        compiler_params=_cparams("parallel", "parallel"),
    )(*args)


# --------------------------------------------------------------------------
# fused temporal conv (GN+SiLU -> Conv3d k=(3,1,1), pad (1,0,0)), spatially tiled;
# identity residual fused into conv4
# --------------------------------------------------------------------------

def _temporal_conv_kernel(x_ref, mean_ref, rstd_ref, g_ref, b_ref, w_ref, bias_ref, *rest,
                          F, ts, C, Cout, has_res):
    res_ref = rest[0] if has_res else None
    o_ref = rest[-1]

    x = x_ref[0].astype(jnp.float32)                           # (F, ts, C)
    x = (x - mean_ref[0]) * rstd_ref[0] * g_ref[...] + b_ref[...]
    x = x * jax.nn.sigmoid(x)
    zf = jnp.zeros((1, ts, C), jnp.float32)
    xp = jnp.concatenate([zf, x, zf], axis=0).astype(jnp.bfloat16)   # zero frame pad in VMEM

    acc = jnp.zeros((F * ts, Cout), jnp.float32)
    for kf in range(3):
        acc = acc + jnp.dot(xp[kf:kf + F].reshape(F * ts, C), w_ref[kf],
                            preferred_element_type=jnp.float32)
    acc = acc + bias_ref[...]
    if has_res:
        acc = acc + res_ref[0].reshape(F * ts, Cout).astype(jnp.float32)
    o_ref[0] = acc.reshape(F, ts, Cout).astype(o_ref.dtype)


def temporal_conv(x_bfsc, mean, rstd, gamma, beta, w3, bias, residual=None):
    B, F_, S, C = x_bfsc.shape
    Cout = w3.shape[-1]
    bytes_per_col = (F_ + 2) * C * 8 + F_ * Cout * 6 + 64
    max_cols = max(8, int(((_VMEM_LIMIT // 3) // bytes_per_col) // 8) * 8)
    ts = _divisor_tile(S, min(S, max_cols), 8)
    Rs = S // ts

    args = [x_bfsc, mean, rstd,
            jnp.asarray(gamma, jnp.float32).reshape(1, C),
            jnp.asarray(beta, jnp.float32).reshape(1, C),
            w3.astype(jnp.bfloat16), jnp.asarray(bias, jnp.float32).reshape(1, Cout)]
    in_specs = [pl.BlockSpec((1, F_, ts, C), lambda i, s: (i, 0, s, 0)),
                pl.BlockSpec((1, 1, C), lambda i, s: (i, 0, 0)),
                pl.BlockSpec((1, 1, C), lambda i, s: (i, 0, 0)),
                pl.BlockSpec((1, C), lambda i, s: (0, 0)),
                pl.BlockSpec((1, C), lambda i, s: (0, 0)),
                pl.BlockSpec((3, C, Cout), lambda i, s: (0, 0, 0)),
                pl.BlockSpec((1, Cout), lambda i, s: (0, 0))]
    if residual is not None:
        args.append(residual)
        in_specs.append(pl.BlockSpec((1, F_, ts, Cout), lambda i, s: (i, 0, s, 0)))

    kern = functools.partial(_temporal_conv_kernel, F=F_, ts=ts, C=C, Cout=Cout,
                             has_res=residual is not None)
    return pl.pallas_call(
        kern,
        out_shape=jax.ShapeDtypeStruct((B, F_, S, Cout), x_bfsc.dtype),
        grid=(B, Rs),
        in_specs=in_specs,
        out_specs=pl.BlockSpec((1, F_, ts, Cout), lambda i, s: (i, 0, s, 0)),
        compiler_params=_cparams("parallel", "parallel"),
    )(*args)


# --------------------------------------------------------------------------
# attention: query-tiled, K/V resident per sample, single fused out-projection + residual
# (1/sqrt(dh) scale is pre-folded into the Q projection weights)
# --------------------------------------------------------------------------

def _attn_kernel(q_ref, kv_ref, wo_ref, bo_ref, res_ref, o_ref, *, heads):
    # TODO(synk): flash-style online-softmax KV tiling for long sequences (v7x VMEM).
    q = q_ref[0]                                               # (tq, C) bf16
    kv = kv_ref[0]                                             # (Lk, 2C) bf16
    C = q.shape[-1]
    dh = C // heads
    outs = []
    for hd in range(heads):
        lo = hd * dh
        s = jax.lax.dot_general(q[:, lo:lo + dh], kv[:, lo:lo + dh],
                                (((1,), (1,)), ((), ())),
                                preferred_element_type=jnp.float32)
        s = s - jnp.max(s, axis=-1, keepdims=True)
        p = jnp.exp(s)
        p = p * pl.reciprocal(jnp.sum(p, axis=-1, keepdims=True), approx=True)
        outs.append(jnp.dot(p.astype(jnp.bfloat16), kv[:, C + lo:C + lo + dh],
                            preferred_element_type=jnp.float32))
    oc = jnp.concatenate(outs, axis=-1).astype(jnp.bfloat16)   # (tq, C): one deep out-proj dot
    out = jnp.dot(oc, wo_ref[...], preferred_element_type=jnp.float32) + bo_ref[...]
    out = out + res_ref[0].astype(jnp.float32)
    o_ref[0] = out.astype(o_ref.dtype)


def attention(q, kv, wo, bo, residual, heads):
    """q: (N, L, C), kv: (N, Lk, 2C).  K/V are fetched once per sample and stay resident
    across the query tiles (block index constant over the inner grid axis)."""
    N, L, C = q.shape
    Lk = kv.shape[1]
    tq = _divisor_tile(L, 512, 8)
    return pl.pallas_call(
        functools.partial(_attn_kernel, heads=heads),
        out_shape=jax.ShapeDtypeStruct((N, L, C), residual.dtype),
        grid=(N, L // tq),
        in_specs=[pl.BlockSpec((1, tq, C), lambda i, qi: (i, qi, 0)),
                  pl.BlockSpec((1, Lk, 2 * C), lambda i, qi: (i, 0, 0)),
                  pl.BlockSpec((C, C), lambda i, qi: (0, 0)),
                  pl.BlockSpec((1, C), lambda i, qi: (0, 0)),
                  pl.BlockSpec((1, tq, C), lambda i, qi: (i, qi, 0))],
        out_specs=pl.BlockSpec((1, tq, C), lambda i, qi: (i, qi, 0)),
        compiler_params=_cparams("parallel", "arbitrary"),
    )(q, kv, wo.astype(jnp.bfloat16), jnp.asarray(bo, jnp.float32).reshape(1, C), residual)


# --------------------------------------------------------------------------
# composite modules
# --------------------------------------------------------------------------

def resnet_block(x, temb, p, groups, eps, output_scale_factor):
    """ResnetBlock2D: GN+SiLU->conv1(+temb) -> GN+SiLU->conv2(+shortcut residual, /osf)."""
    N, H, W, Cin = x.shape
    Cout = p["c1_w"].shape[-1]
    mean1, rstd1 = gn_stats(x.reshape(N, H * W, Cin), groups, eps)
    t = matmul(temb, p["temb_w"], p["temb_b"], prologue="silu")        # SiLU(temb) @ W + b
    h = conv3x3(x, p["c1_w"], p["c1_b"],
                gn=(mean1, rstd1, p["n1_g"], p["n1_b"]), act="silu", temb_add=t)
    mean2, rstd2 = gn_stats(h.reshape(N, H * W, Cout), groups, eps)
    shortcut = (p["sc_w"], p["sc_b"]) if "sc_w" in p else None
    return conv3x3(h, p["c2_w"], p["c2_b"],
                   gn=(mean2, rstd2, p["n2_g"], p["n2_b"]), act="silu",
                   residual=x, shortcut=shortcut, scale=1.0 / output_scale_factor)


def temporal_conv_layer(x, p, num_frames):
    """TemporalConvLayer: 4x (GN+SiLU->Conv3d k=(3,1,1)); identity fused into conv4 epilogue."""
    BF, H, W, C = x.shape
    B = BF // num_frames
    S = H * W
    h = x.reshape(B, num_frames, S, C)
    identity = h
    groups = min(32, C)                 # nn.GroupNorm(32, dim), eps 1e-5
    for j, blk in enumerate(p["blocks"]):
        mean, rstd = gn_stats(h.reshape(B, num_frames * S, C), groups, 1e-5)
        res = identity if j == len(p["blocks"]) - 1 else None
        h = temporal_conv(h, mean, rstd, blk["g"], blk["b"], blk["w"], blk["bias"], residual=res)
    return h.reshape(BF, H, W, C)


def basic_transformer_block(h2, N, S, enc, p, heads):
    C = h2.shape[-1]
    Lk, cross_dim = enc.shape[1], enc.shape[2]
    # self-attention: LN1 fused into Q / KV matmul prologues; separate Q and KV projections keep
    # the attention blocks lane-dense (full last dim) and K/V resident across query tiles.
    q1 = matmul(h2, p["q1_w"], prologue="ln", ln_gamma=p["ln1_g"], ln_beta=p["ln1_b"])
    kv1 = matmul(h2, p["kv1_w"], prologue="ln", ln_gamma=p["ln1_g"], ln_beta=p["ln1_b"])
    h2 = attention(q1.reshape(N, S, C), kv1.reshape(N, S, 2 * C), p["o1_w"], p["o1_b"],
                   h2.reshape(N, S, C), heads).reshape(N * S, C)
    # cross-attention
    q2 = matmul(h2, p["q2_w"], prologue="ln", ln_gamma=p["ln2_g"], ln_beta=p["ln2_b"])
    kv2 = matmul(enc.reshape(N * Lk, cross_dim), p["kv2_w"])
    h2 = attention(q2.reshape(N, S, C), kv2.reshape(N, Lk, 2 * C), p["o2_w"], p["o2_b"],
                   h2.reshape(N, S, C), heads).reshape(N * S, C)
    # GEGLU feed-forward: LN3 fused into the GEGLU matmul; residual fused into the 2nd matmul
    g = geglu_matmul(h2, p["ff1_wh"], p["ff1_wg"], p["ff1_bh"], p["ff1_bg"],
                     ln_gamma=p["ln3_g"], ln_beta=p["ln3_b"])
    h2 = matmul(g, p["ff2_w"], p["ff2_b"], residual=h2)
    return h2


def transformer2d(x, enc, p, heads, groups):
    """Transformer2DModel (continuous input, 1x1-conv projections == channel linears)."""
    N, H, W, C = x.shape
    S = H * W
    x_flat = x.reshape(N, S, C)
    mean, rstd = gn_stats(x_flat, groups, 1e-6)
    h = gn_linear(x_flat, mean, rstd, p["norm_g"], p["norm_b"], p["proj_in_w"], p["proj_in_b"])
    h2 = h.reshape(N * S, C)
    for blk in p["blocks"]:
        h2 = basic_transformer_block(h2, N, S, enc, blk, heads)
    out2 = matmul(h2, p["proj_out_w"], p["proj_out_b"], residual=x_flat.reshape(N * S, C))
    return out2.reshape(N, H, W, C)


def small_cross_attn_up_block_3d(params, hidden_states, res_hidden_states_tuple, temb,
                                 encoder_hidden_states, num_frames, *,
                                 num_attention_heads, resnet_groups, resnet_eps,
                                 output_scale_factor=1.0):
    # attention_mask / cross_attention_kwargs / upsample_size are assumed None (inference).
    in_dtype = hidden_states.dtype
    x = jnp.transpose(hidden_states, (0, 2, 3, 1)).astype(jnp.bfloat16)      # NCHW -> NHWC bf16
    skips = [jnp.transpose(r, (0, 2, 3, 1)).astype(jnp.bfloat16) for r in res_hidden_states_tuple]
    temb = jnp.asarray(temb, jnp.float32)
    enc = jnp.asarray(encoder_hidden_states, jnp.bfloat16)
    for rp, tp, ap in zip(params["resnets"], params["temp_convs"], params["attentions"]):
        skip = skips.pop()
        x = jnp.concatenate([x, skip], axis=-1)                              # torch.cat(dim=1)
        x = resnet_block(x, temb, rp, resnet_groups, resnet_eps, output_scale_factor)
        x = temporal_conv_layer(x, tp, num_frames)
        x = transformer2d(x, enc, ap, num_attention_heads, resnet_groups)
    if "upsample" in params:
        x = conv3x3(x, params["upsample"]["w"], params["upsample"]["b"], upsample2x=True)
    return jnp.transpose(x, (0, 3, 1, 2)).astype(in_dtype)                   # NHWC -> NCHW


# --------------------------------------------------------------------------
# parameter init (weights stored in kernel layouts; matmul/conv weights bf16;
# the attention 1/sqrt(dh) scale is folded into the Q projection weights here)
# --------------------------------------------------------------------------

def init_params(seed, in_channels, out_channels, prev_output_channel, temb_channels,
                cross_attention_dim, num_layers, num_attention_heads, add_upsample=True,
                transformer_layers_per_block=1):
    base = jax.random.PRNGKey(seed)
    counter = [0]

    def nk():
        counter[0] += 1
        return jax.random.fold_in(base, counter[0])

    def w(shape, std=0.05):
        return (jax.random.normal(nk(), shape, jnp.float32) * std).astype(jnp.bfloat16)

    ones = lambda n: jnp.ones((n,), jnp.float32)
    zeros = lambda n: jnp.zeros((n,), jnp.float32)
    C = out_channels
    attn_scale = 1.0 / math.sqrt(C // num_attention_heads)     # pre-folded into Q weights

    resnets, temp_convs, attentions = [], [], []
    for i in range(num_layers):
        res_skip = in_channels if i == num_layers - 1 else out_channels
        res_in = prev_output_channel if i == 0 else out_channels
        cin = res_in + res_skip
        rp = dict(n1_g=ones(cin), n1_b=zeros(cin),
                  c1_w=w((9, cin, C)), c1_b=zeros(C),
                  temb_w=w((temb_channels, C)), temb_b=zeros(C),
                  n2_g=ones(C), n2_b=zeros(C),
                  c2_w=w((9, C, C)), c2_b=zeros(C))
        if cin != C:
            rp["sc_w"] = w((cin, C))
            rp["sc_b"] = zeros(C)
        resnets.append(rp)

        blocks = []
        for j in range(4):
            zero = (j == 3)                     # conv4 is zero-initialised in TemporalConvLayer
            blocks.append(dict(g=ones(C), b=zeros(C),
                               w=jnp.zeros((3, C, C), jnp.bfloat16) if zero else w((3, C, C)),
                               bias=zeros(C)))
        temp_convs.append(dict(blocks=blocks))

        tblocks = []
        for _ in range(transformer_layers_per_block):
            tblocks.append(dict(
                ln1_g=ones(C), ln1_b=zeros(C),
                q1_w=(w((C, C)) * attn_scale).astype(jnp.bfloat16),
                kv1_w=w((C, 2 * C)),
                o1_w=w((C, C)), o1_b=zeros(C),
                ln2_g=ones(C), ln2_b=zeros(C),
                q2_w=(w((C, C)) * attn_scale).astype(jnp.bfloat16),
                kv2_w=w((cross_attention_dim, 2 * C)),
                o2_w=w((C, C)), o2_b=zeros(C),
                ln3_g=ones(C), ln3_b=zeros(C),
                ff1_wh=w((C, 4 * C)), ff1_wg=w((C, 4 * C)),
                ff1_bh=zeros(4 * C), ff1_bg=zeros(4 * C),
                ff2_w=w((4 * C, C)), ff2_b=zeros(C)))
        attentions.append(dict(norm_g=ones(C), norm_b=zeros(C),
                               proj_in_w=w((C, C)), proj_in_b=zeros(C),
                               blocks=tblocks,
                               proj_out_w=w((C, C)), proj_out_b=zeros(C)))

    params = dict(resnets=resnets, temp_convs=temp_convs, attentions=attentions)
    if add_upsample:
        params["upsample"] = dict(w=w((9, C, C)), b=zeros(C))
    return params


# --------------------------------------------------------------------------
# main
# --------------------------------------------------------------------------

if __name__ == "__main__":
    B, NUM_FRAMES, H, W = 2, 2, 8, 8
    IN_CH, OUT_CH, PREV_CH = 32, 32, 32
    TEMB_CH, CROSS_DIM, SEQ = 64, 48, 8
    HEADS, GROUPS, EPS = 2, 8, 1e-6
    NUM_LAYERS = 1

    key = jax.random.PRNGKey(0)
    k1, k2, k3, k4 = jax.random.split(key, 4)
    hidden_states = jax.random.normal(k1, (B * NUM_FRAMES, PREV_CH, H, W), jnp.float32)  # NCHW
    skip = jax.random.normal(k2, (B * NUM_FRAMES, IN_CH, H, W), jnp.float32)
    temb = jax.random.normal(k3, (B * NUM_FRAMES, TEMB_CH), jnp.float32)
    encoder_hidden_states = jax.random.normal(k4, (B * NUM_FRAMES, SEQ, CROSS_DIM), jnp.float32)

    params = init_params(0, IN_CH, OUT_CH, PREV_CH, TEMB_CH, CROSS_DIM, NUM_LAYERS,
                         HEADS, add_upsample=True)

    out = small_cross_attn_up_block_3d(
        params, hidden_states, (skip,), temb, encoder_hidden_states, NUM_FRAMES,
        num_attention_heads=HEADS, resnet_groups=GROUPS, resnet_eps=EPS,
        output_scale_factor=1.0)
    out = jax.block_until_ready(out)

    assert out.shape == (B * NUM_FRAMES, OUT_CH, 2 * H, 2 * W), out.shape
    assert out.dtype == hidden_states.dtype
    assert bool(jnp.all(jnp.isfinite(out)))
    print("KERNEL_OK")
</pallas_src>

<mosaic_0001>
module attributes {stable_mosaic.version = 11 : i64} {
  func.func @_gn_stats_kernel(%arg0: i32, %arg1: i32, %arg2: memref<1x64x64xbf16, #tpu.memory_space<vmem>>, %arg3: memref<64x8xf32, #tpu.memory_space<vmem>>, %arg4: memref<8x64xf32, #tpu.memory_space<vmem>>, %arg5: memref<1x1x64xf32, #tpu.memory_space<vmem>>, %arg6: memref<1x1x64xf32, #tpu.memory_space<vmem>>, %arg7: memref<1x64xf32, #tpu.memory_space<vmem>>, %arg8: memref<1x64xf32, #tpu.memory_space<vmem>>) attributes {dimension_semantics = [#tpu.dimension_semantics<parallel>, #tpu.dimension_semantics<arbitrary>], iteration_bounds = array<i64: 4, 1>, scalar_prefetch = 0 : i64, scratch_operands = 2 : i64, tpu.core_type = #tpu.core_type<tc>, window_params = [{transform_indices = @transform_0, window_bounds = array<i64: 1, 64, 64>}, {pipeline_mode = #tpu.pipeline_mode<synchronous>, transform_indices = @transform_1, window_bounds = array<i64: 64, 8>}, {pipeline_mode = #tpu.pipeline_mode<synchronous>, transform_indices = @transform_2, window_bounds = array<i64: 8, 64>}, {transform_indices = @transform_3, window_bounds = array<i64: 1, 1, 64>}, {transform_indices = @transform_4, window_bounds = array<i64: 1, 1, 64>}]} {
    %c0_i32 = arith.constant 0 : i32
    %0 = arith.cmpi eq, %arg1, %c0_i32 : i32
    %1 = arith.extui %0 : i1 to i32
    %c0_i32_0 = arith.constant 0 : i32
    %2 = arith.cmpi ne, %1, %c0_i32_0 : i32
    scf.if %2 {
      %cst_14 = arith.constant 0.000000e+00 : f32
      %20 = vector.broadcast %cst_14 : f32 to vector<1x64xf32>
      %c0_15 = arith.constant 0 : index
      %c0_16 = arith.constant 0 : index
      %21 = vector.load %arg7[%c0_15, %c0_16] : memref<1x64xf32, #tpu.memory_space<vmem>>, vector<1x64xf32>
      tpu.vector_store %arg7[%c0_15, %c0_16], %20 {strides = array<i32>} : memref<1x64xf32, #tpu.memory_space<vmem>>, vector<1x64xf32>,
      %cst_17 = arith.constant 0.000000e+00 : f32
      %22 = vector.broadcast %cst_17 : f32 to vector<1x64xf32>
      %c0_18 = arith.constant 0 : index
      %c0_19 = arith.constant 0 : index
      %23 = vector.load %arg8[%c0_18, %c0_19] : memref<1x64xf32, #tpu.memory_space<vmem>>, vector<1x64xf32>
      tpu.vector_store %arg8[%c0_18, %c0_19], %22 {strides = array<i32>} : memref<1x64xf32, #tpu.memory_space<vmem>>, vector<1x64xf32>,
    } else {
    }
    %c0 = arith.constant 0 : index
    %c0_1 = arith.constant 0 : index
    %c0_2 = arith.constant 0 : index
    %3 = vector.load %arg2[%c0, %c0_1, %c0_2] : memref<1x64x64xbf16, #tpu.memory_space<vmem>>, vector<1x64x64xbf16>
    %4 = vector.shape_cast %3 : vector<1x64x64xbf16> to vector<64x64xbf16>
    %5 = arith.extf %4 : vector<64x64xbf16> to vector<64x64xf32>
    %c0_3 = arith.constant 0 : index
    %c0_4 = arith.constant 0 : index
    %6 = vector.load %arg7[%c0_3, %c0_4] : memref<1x64xf32, #tpu.memory_space<vmem>>, vector<1x64xf32>
    %cst = arith.constant dense<0.000000e+00> : vector<64xf32>
    %7 = vector.multi_reduction <add>, %5, %cst [0] : vector<64x64xf32> to vector<64xf32>
    %8 = vector.shape_cast %7 : vector<64xf32> to vector<1x64xf32>
    %9 = arith.addf %6, %8 : vector<1x64xf32>
    %c0_5 = arith.constant 0 : index
    %c0_6 = arith.constant 0 : index
    %10 = vector.load %arg7[%c0_5, %c0_6] : memref<1x64xf32, #tpu.memory_space<vmem>>, vector<1x64xf32>
    tpu.vector_store %arg7[%c0_5, %c0_6], %9 {strides = array<i32>} : memref<1x64xf32, #tpu.memory_space<vmem>>, vector<1x64xf32>,
    %c0_7 = arith.constant 0 : index
    %c0_8 = arith.constant 0 : index
    %11 = vector.load %arg8[%c0_7, %c0_8] : memref<1x64xf32, #tpu.memory_space<vmem>>, vector<1x64xf32>
    %12 = arith.mulf %5, %5 : vector<64x64xf32>
    %cst_9 = arith.constant dense<0.000000e+00> : vector<64xf32>
    %13 = vector.multi_reduction <add>, %12, %cst_9 [0] : vector<64x64xf32> to vector<64xf32>
    %14 = vector.shape_cast %13 : vector<64xf32> to vector<1x64xf32>
    %15 = arith.addf %11, %14 : vector<1x64xf32>
    %c0_10 = arith.constant 0 : index
    %c0_11 = arith.constant 0 : index
    %16 = vector.load %arg8[%c0_10, %c0_11] : memref<1x64xf32, #tpu.memory_space<vmem>>, vector<1x64xf32>
    tpu.vector_store %arg8[%c0_10, %c0_11], %15 {strides = array<i32>} : memref<1x64xf32, #tpu.memory_space<vmem>>, vector<1x64xf32>,
    %c0_i32_12 = arith.constant 0 : i32
    %17 = arith.cmpi eq, %arg1, %c0_i32_12 : i32
    %18 = arith.extui %17 : i1 to i32
    %c0_i32_13 = arith.constant 0 : i32
    %19 = arith.cmpi ne, %18, %c0_i32_13 : i32
    scf.if %19 {
      %c0_14 = arith.constant 0 : index
      %c0_15 = arith.constant 0 : index
      %20 = vector.load %arg7[%c0_14, %c0_15] : memref<1x64xf32, #tpu.memory_space<vmem>>, vector<1x64xf32>
      %c0_16 = arith.constant 0 : index
      %c0_17 = arith.constant 0 : index
      %21 = vector.load %arg3[%c0_16, %c0_17] : memref<64x8xf32, #tpu.memory_space<vmem>>, vector<64x8xf32>
      %cst_18 = arith.constant dense<0.000000e+00> : vector<1x8xf32>
      %22 = tpu.matmul %20, %21, %cst_18 {dimension_numbers = #tpu.dot_dimension_numbers<[1], [0], [0], [1], [0, 0, 1, 1], [], []>} : vector<1x64xf32>, vector<64x8xf32>, vector<1x8xf32> -> vector<1x8xf32>
      %c0_19 = arith.constant 0 : index
      %c0_20 = arith.constant 0 : index
      %23 = vector.load %arg8[%c0_19, %c0_20] : memref<1x64xf32, #tpu.memory_space<vmem>>, vector<1x64xf32>
      %c0_21 = arith.constant 0 : index
      %c0_22 = arith.constant 0 : index
      %24 = vector.load %arg3[%c0_21, %c0_22] : memref<64x8xf32, #tpu.memory_space<vmem>>, vector<64x8xf32>
      %cst_23 = arith.constant dense<0.000000e+00> : vector<1x8xf32>
      %25 = tpu.matmul %23, %24, %cst_23 {dimension_numbers = #tpu.dot_dimension_numbers<[1], [0], [0], [1], [0, 0, 1, 1], [], []>} : vector<1x64xf32>, vector<64x8xf32>, vector<1x8xf32> -> vector<1x8xf32>
      %cst_24 = arith.constant 0.001953125 : f32
      %26 = vector.broadcast %cst_24 : f32 to vector<1x8xf32>
      %27 = arith.mulf %22, %26 : vector<1x8xf32>
      %cst_25 = arith.constant 0.001953125 : f32
      %28 = vector.broadcast %cst_25 : f32 to vector<1x8xf32>
      %29 = arith.mulf %25, %28 : vector<1x8xf32>
      %30 = arith.mulf %27, %27 : vector<1x8xf32>
      %31 = arith.subf %29, %30 : vector<1x8xf32>
      %cst_26 = arith.constant 0.000000e+00 : f32
      %32 = vector.broadcast %cst_26 : f32 to vector<1x8xf32>
      %33 = arith.maximumf %31, %32 : vector<1x8xf32>
      %cst_27 = arith.constant 9.99999997E-7 : f32
      %34 = vector.broadcast %cst_27 : f32 to vector<1x8xf32>
      %35 = arith.addf %33, %34 : vector<1x8xf32>
      %36 = math.rsqrt %35 : vector<1x8xf32>
      %c0_28 = arith.constant 0 : index
      %c0_29 = arith.constant 0 : index
      %37 = vector.load %arg4[%c0_28, %c0_29] : memref<8x64xf32, #tpu.memory_space<vmem>>, vector<8x64xf32>
      %cst_30 = arith.constant dense<0.000000e+00> : vector<1x64xf32>
      %38 = tpu.matmul %27, %37, %cst_30 {dimension_numbers = #tpu.dot_dimension_numbers<[1], [0], [0], [1], [0, 0, 1, 1], [], []>} : vector<1x8xf32>, vector<8x64xf32>, vector<1x64xf32> -> vector<1x64xf32>
      %c0_31 = arith.constant 0 : index
      %c0_32 = arith.constant 0 : index
      %c0_33 = arith.constant 0 : index
      %39 = vector.load %arg5[%c0_31, %c0_32, %c0_33] : memref<1x1x64xf32, #tpu.memory_space<vmem>>, vector<1x1x64xf32>
      %40 = vector.shape_cast %39 : vector<1x1x64xf32> to vector<1x64xf32>
      %41 = vector.shape_cast %38 : vector<1x64xf32> to vector<1x1x64xf32>
      tpu.vector_store %arg5[%c0_31, %c0_32, %c0_33], %41 {strides = array<i32>} : memref<1x1x64xf32, #tpu.memory_space<vmem>>, vector<1x1x64xf32>,
      %c0_34 = arith.constant 0 : index
      %c0_35 = arith.constant 0 : index
      %42 = vector.load %arg4[%c0_34, %c0_35] : memref<8x64xf32, #tpu.memory_space<vmem>>, vector<8x64xf32>
      %cst_36 = arith.constant dense<0.000000e+00> : vector<1x64xf32>
      %43 = tpu.matmul %36, %42, %cst_36 {dimension_numbers = #tpu.dot_dimension_numbers<[1], [0], [0], [1], [0, 0, 1, 1], [], []>} : vector<1x8xf32>, vector<8x64xf32>, vector<1x64xf32> -> vector<1x64xf32>
      %c0_37 = arith.constant 0 : index
      %c0_38 = arith.constant 0 : index
      %c0_39 = arith.constant 0 : index
      %44 = vector.load %arg6[%c0_37, %c0_38, %c0_39] : memref<1x1x64xf32, #tpu.memory_space<vmem>>, vector<1x1x64xf32>
      %45 = vector.shape_cast %44 : vector<1x1x64xf32> to vector<1x64xf32>
      %46 = vector.shape_cast %43 : vector<1x64xf32> to vector<1x1x64xf32>
      tpu.vector_store %arg6[%c0_37, %c0_38, %c0_39], %46 {strides = array<i32>} : memref<1x1x64xf32, #tpu.memory_space<vmem>>, vector<1x1x64xf32>,
    } else {
    }
    return
  }
  func.func @transform_0(%arg0: i32, %arg1: i32) -> (i32, i32, i32) {
    %c0_i32 = arith.constant 0 : i32
    %c0_i32_0 = arith.constant 0 : i32
    return %arg0, %arg1, %c0_i32 : i32, i32, i32
  }
  func.func @transform_1(%arg0: i32, %arg1: i32) -> (i32, i32) {
    %c0_i32 = arith.constant 0 : i32
    %c0_i32_0 = arith.constant 0 : i32
    %c0_i32_1 = arith.constant 0 : i32
    return %c0_i32, %c0_i32_0 : i32, i32
  }
  func.func @transform_2(%arg0: i32, %arg1: i32) -> (i32, i32) {
    %c0_i32 = arith.constant 0 : i32
    %c0_i32_0 = arith.constant 0 : i32
    %c0_i32_1 = arith.constant 0 : i32
    return %c0_i32, %c0_i32_0 : i32, i32
  }
  func.func @transform_3(%arg0: i32, %arg1: i32) -> (i32, i32, i32) {
    %c0_i32 = arith.constant 0 : i32
    %c0_i32_0 = arith.constant 0 : i32
    %c0_i32_1 = arith.constant 0 : i32
    return %arg0, %c0_i32, %c0_i32_0 : i32, i32, i32
  }
  func.func @transform_4(%arg0: i32, %arg1: i32) -> (i32, i32, i32) {
    %c0_i32 = arith.constant 0 : i32
    %c0_i32_0 = arith.constant 0 : i32
    %c0_i32_1 = arith.constant 0 : i32
    return %arg0, %c0_i32, %c0_i32_0 : i32, i32, i32
  }
}

</mosaic_0001>

<bundles_post_ra>
// kernel: tpu_custom_call.1
= control target key start
LH: loop header
LB: loop body
LE: loop exit
PB: predicated region body
PF: predicated region fallthrough
CT: control target
= control target key end

     0   :  { %10 = vsyncpa [#allocation5], 0  ;;  %s1434_s0 = inlined_call_operand.hbm [shape: bf16[4,64,64], index: 0, kind: input, shape index: {}]   ;;  %s1435_s1 = inlined_call_operand.vmem [shape: f32[64,8], index: 1, kind: input, shape index: {}]   ;;  %s1436_s2 = inlined_call_operand.vmem [shape: f32[8,64], index: 2, kind: input, shape index: {}]   ;;  %s1437_s3 = inlined_call_operand.hbm [shape: f32[4,1,64], index: 3, kind: output, shape index: {0}]   ;;  %s1438_s4 = inlined_call_operand.hbm [shape: f32[4,1,64], index: 4, kind: output, shape index: {1}]  }
   0x1   :  { %12 = vsyncpa [#allocation5 + $0x1], 0 }
   0x2   :  { %13 = vsyncpa [#allocation6], 0 }
   0x3   :  { %15 = vsyncpa [#allocation6 + $0x1], 0 }
   0x4   :  { %16 = vsyncpa [#allocation9], 0 }
   0x5   :  { %18 = vsyncpa [#allocation9 + $0x1], 0  ;;  %s1159_s15 = smov 0   ;;  %s1161_s16 = smov 0  }
   0x6   :  { %s1163_s17 = smov 0   ;;  %s1165_s18 = smov 0  }
   0x7   :  { %s1167_s19 = smov 0   ;;  %s1169_s20 = smov 0  }
   0x8 LB: > { %s775_s21 = sadd.s32 4294967295, %s1124_s20   ;;  %s776_s22 = sadd.s32 4294967294, %s1124_s20   ;;  %s1124_s20 = sphi %s1169_s20, %s24_s20   ;;  %s1120_s19 = sphi %s1167_s19, %s1452_s19   ;;  %s1116_s18 = sphi %s1165_s18, %s1451_s18   ;;  %s1112_s17 = sphi %s1163_s17, %s1450_s17   ;;  %s1108_s16 = sphi %s1161_s16, %s1449_s16   ;;  %s1104_s15 = sphi %s1159_s15, %s1448_s15  }
   0x9   : > { %s36_s23 = sadd.s32 1, %s1120_s19  ;;  %s45_s24 = sadd.s32 1, %s1112_s17 }
   0xa   : > { %p38_p0 = scmp.ge.s32.totalorder %s36_s23, 4  ;;  %p52_p1 = scmp.ne.s32.totalorder %s1112_s17, %s1108_s16 }
   0xb   : > { %p53_p2 = scmp.eq.s32.totalorder %s1124_s20, 0  ;;  %p58_p3 = scmp.ne.s32.totalorder %s1108_s16, %s1104_s15 }
   0xc   : > { %s1454_s23 = smov (%p38_p0, %s36_s23), 0  ;;  %p59_p5 = scmp.eq.s32.totalorder %s775_s21, 0 }
   0xd   : > { %p1200_p4 = por %p53_p2, %p52_p1  ;;  %s40_s26 = ssub.s32 %s1120_s19, %s1454_s23 }
   0xe   : > { %p124_p6 = scmp.eq.s32.totalorder %s775_s21, 3  ;;  %p43_p7 = scmp.eq.s32.totalorder %s40_s26, 0 }
   0xf   : > { %p1206_p8 = por %p59_p5, %p58_p3  ;;  %p130_p10 = scmp.eq.s32.totalorder %s776_s22, 3 }
  0x10   : > { %p1210_p9 = por %p124_p6, %p52_p1  ;;  %p923_p12 = scmp.lt.s32.totalorder %s1124_s20, 4 }
  0x11   : > { %s1215_s29 = scalar_select %p43_p7, %s1112_s17, %s45_s24  }
  0x12   : > { %s1442_s28 = scalar_select %p1210_p9, 1, 0 }
  0x13   : > { %p1217_p11 = por %p130_p10, %p58_p3  ;;  %s182_s5 = sand.u32 1, %s1112_s17  }
  0x14   : > { %s779_s6 = sshll.u32 %s182_s5, 5  ;;  %s792_s7 = sshll.u32 %s1120_s19, 9 }
  0x15   : > { %s1443_s30 = scalar_select %p1217_p11, 1, 0 }
  0x16   : > { %s1227_s10 = scalar_lea.hbm %s1434_s0, %s792_s7  ;;  %s186_s11 = scalar_lea.vmem [#allocation4], %s779_s6 }
  0x17   : > { %s195_s12 = sshll.u32 %s186_s11, 4  ;;  %p1233_p13 = pnand %p923_p12, %p1200_p4  ;;  %s1229_s12 = int_to_ptr.vmem [resolvable:$true] %s195_s12 }
  0x18   : > { %s1238_s14 = scalar_lea.sflag [#allocation5], %s182_s5  ;;  %s980_s21 = scalar_lea.hbm %s1227_s10, 512 }
  0x19   : > { %p981_p1 = scmp.ne.s32.totalorder %s1227_s10, %s980_s21  ;;  %p982_p2 = pneg %p1233_p13 }
  0x1a   : > { %s985_s25 = scalar_lea.hbm %s1434_s0, 2048  ;;  %p986_p4 = scmp.lt.u32.totalorder %s1227_s10, %s1434_s0 }
  0x1b   : > { %p983_p3 = pnand %p982_p2, %p981_p1  ;;  %p987_p6 = scmp.lt.u32.totalorder %s985_s25, %s980_s21 }
  0x1c   : > { %p989_p10 = scmp.lt.u32.totalorder %s980_s21, %s1227_s10 }
  0x1d   : > { %p984_p5 = pneg %p983_p3  ;;  %p988_p7 = por %p987_p6, %p986_p4 }
  0x1f   : > { %p990_p12 = por %p989_p10, %p988_p7 }
  0x21   : > { %p991_p0 = pnand %p990_p12, %p984_p5 }
  0x23   : > { %994 = shalt.err (!%p991_p0)
}
  0x24   : > { %s995_s5 = scalar_lea.vmem %s1229_s12, 512  ;;  %s1126_s7 = smov [#allocation4]  }
  0x25   : > { %p996_p1 = scmp.ne.s32.totalorder %s1229_s12, %s995_s5  ;;  %s1000_s8 = sshll.u32 %s1126_s7, 4  ;;  %s1001_s8 = int_to_ptr.vmem [resolvable:$false] %s1000_s8 }
  0x26   : > { %s1002_s9 = scalar_lea.vmem %s1001_s8, 1024  ;;  %p1003_p9 = scmp.lt.s32.totalorder %s1229_s12, %s1001_s8 }
  0x27   : > { %p998_p3 = pnand %p996_p1, %p982_p2  ;;  %p1004_p4 = scmp.lt.s32.totalorder %s1002_s9, %s995_s5 }
  0x29   : > { %p999_p11 = pneg %p998_p3  ;;  %p1005_p6 = por %p1004_p4, %p1003_p9 }
  0x2b   : > { %p1006_p7 = pnand %p1005_p6, %p999_p11 }
  0x2d   : > { %1009 = shalt.err (!%p1006_p7)
}
  0x2e   : > { %s1127_s11 = smov 64   ;;  %s1128_s21 = smov 4  }
  0x2f   : > { %915 = dma.hbm_to_vmem [thread:$0]  (!%p1233_p13), %s1227_s10, 512, %s1229_s12, %s1238_s14, %s1127_s11, %s1127_s11, %s1128_s21  }
  0x30   : > { %p203_p0 = scmp.lt.s32.totalorder %s1124_s20, 5  ;;  %p1445_p2 = scmp.ge.s32.totalorder %s1124_s20, 1 }
  0x32   : > { %p204_p5 = pnand %p1445_p2, %p203_p0 }
  0x33   : > { %s1270_s22 = sand.u32 (!%p204_p5), 1, %s1108_s16  }
  0x34   : > { %207 = sbr.rel (%p204_p5) target bundleno = 566 (0x236), region = 32  ;;  %s783_s24 = sshll.u32 (!%p204_p5), %s1270_s22, 5 }
  0x35   : > { %s210_s25 = scalar_lea.sflag (!%p204_p5), [#allocation5], %s1270_s22  ;;  %s1274_s26 = scalar_lea.vmem (!%p204_p5), [#allocation4], %s783_s24 }
  0x3b   : > { %1091 = dma.done.wait (%p1206_p8), %s210_s25, 512  }
  0x3c   : > { %1093 = vsyncadd (%p1206_p8), %s210_s25, 4294966784  ;;  %vm246_vm0 = vcmask 516096   ;;  %v1129_v0 = vmov 0.0|0.0   ;;  %v1130_v1 = vmov 0.0   ;;  %vm1131_vm1 = vmmov 0   ;;  %v327_v2 = vld [vmem:[%s1435_s1] sm:$0xff] }
  0x3d   : > { %882 = vmatprep.subr.bf16.mxu0 %v1129_v0  ;;  %894 = vmatprep.subr.bf16.mxu1 %v1129_v0  ;;  %247 = vst.msk [vmem:[#allocation2] sm:$0x1] %vm246_vm0, %v1130_v1  ;;  %248 = vst.msk [vmem:[#allocation3] sm:$0x1] %vm246_vm0, %v1130_v1  ;;  %v328_v3 = vld [vmem:[%s1435_s1 + $0x8] sm:$0xff]  ;;  %v329_v4 = vld [vmem:[%s1435_s1 + $0x10] sm:$0xff] }
  0x3e   : > { %850 = vmatprep.mubr.msk.f32.mxu0 %vm1131_vm1, %v1130_v1  ;;  %869 = vmatprep.mubr.msk.f32.mxu1 %vm1131_vm1, %v1130_v1  ;;  %v883_v5 = vpack.c.bf16 %v328_v3, %v327_v2  ;;  %v330_v6 = vld [vmem:[%s1435_s1 + $0x18] sm:$0xff]  ;;  %v794_v7 = vld [vmem:[%s1274_s26] sm:$0xff]   ;;  %vm266_vm2 = vcmask 523264   ;;  %v809_v11 = vld [vmem:[%s1274_s26 + $0x8] sm:$0xff]   ;;  %vm490_vm3 = vcmask 64512   ;;  %s788_s13 = sshll.u32 %s1116_s18, 4 }
  0x3f   : > { %v886_v8 = vpack.c.bf16 %v330_v6, %v329_v4  ;;  %v795_v9 = vunpack.c.l.bf16 %v794_v7  ;;  %v796_v10 = vunpack.c.h.bf16 %v794_v7  ;;  %v810_v12 = vld [vmem:[%s1274_s26 + $0x10] sm:$0xff]   ;;  %v331_v13 = vld [vmem:[%s1435_s1 + $0x20] sm:$0xff]  ;;  %v332_v14 = vld [vmem:[%s1435_s1 + $0x28] sm:$0xff]  ;;  %v799_v15 = vunpack.c.l.bf16 %v809_v11  ;;  %s234_s14 = scalar_lea.vmem [#allocation7], %s1270_s22  ;;  %s1352_s8 = scalar_lea.hbm %s1437_s3, %s788_s13 }
  0x40   : > { %884 = vmatpush3.bf16.msra.mxu0 %v883_v5  ;;  %896 = vmatpush3.bf16.msra.mxu1 %v883_v5  ;;  %v800_v16 = vunpack.c.h.bf16 %v809_v11  ;;  %v803_v17 = vunpack.c.l.bf16 %v810_v12  ;;  %v333_v20 = vld [vmem:[%s1435_s1 + $0x30] sm:$0xff]  ;;  %v334_v21 = vld [vmem:[%s1435_s1 + $0x38] sm:$0xff]  ;;  %v889_v25 = vpack.c.bf16 %v332_v14, %v331_v13  ;;  %v804_v26 = vunpack.c.h.bf16 %v810_v12  ;;  %s657_s6 = sshll.u32 %s234_s14, 4  ;;  %s641_s9 = scalar_lea.sflag [#allocation6], %s1270_s22  ;;  %s1354_s6 = int_to_ptr.vmem [resolvable:$true] %s657_s6 }
  0x41   : > { %885 = vmatprep.subr.bf16.mxu0 %v1129_v0  ;;  %897 = vmatprep.subr.bf16.mxu1 %v1129_v0  ;;  %v267_v18 = vsel %vm266_vm2, %v795_v9, 0.0  ;;  %v268_v19 = vsel %vm266_vm2, %v796_v10, 0.0  ;;  %v811_v22 = vld [vmem:[%s1274_s26 + $0x18] sm:$0xff]   ;;  %v270_v24 = vsel %vm266_vm2, %v799_v15, 0.0  ;;  %v292_v28 = vmul.f32 %v795_v9, %v795_v9  ;;  %s1010_s11 = scalar_lea.vmem %s1354_s6, 16  ;;  %p1446_p9 = scmp.ne.s32.totalorder %s1442_s28, 0 }
  0x42   : > { %v269_v23 = vadd.f32 %v268_v19, %v267_v18  ;;  %v272_v27 = vsel %vm266_vm2, %v800_v16, 0.0  ;;  %v293_v30 = vmul.f32 %v796_v10, %v796_v10  ;;  %v294_v31 = vmul.f32 %v799_v15, %v799_v15  ;;  %v489_v19 = vld [vmem:[%s1436_s2] sm:$0xff]  ;;  %p1011_p8 = scmp.ne.s32.totalorder %s1354_s6, %s1010_s11  ;;  %s1132_s21 = smov [#allocation7]  }
  0x43   : > { %v892_v32 = vpack.c.bf16 %v334_v21, %v333_v20  ;;  %v807_v33 = vunpack.c.l.bf16 %v811_v22  ;;  %v274_v34 = vsel %vm266_vm2, %v803_v17, 0.0  ;;  %v295_v35 = vmul.f32 %v800_v16, %v800_v16  ;;  %s1014_s24 = sshll.u32 %s1132_s21, 4  ;;  %s1015_s24 = int_to_ptr.vmem [resolvable:$false] %s1014_s24 }
  0x44   : > { %887 = vmatpush3.bf16.msra.mxu0 %v886_v8  ;;  %899 = vmatpush3.bf16.msra.mxu1 %v886_v8  ;;  %v271_v29 = vadd.f32 %v270_v24, %v269_v23  ;;  %v296_v37 = vmul.f32 %v803_v17, %v803_v17  ;;  %v300_v38 = vsel %vm266_vm2, %v292_v28, 0.0  ;;  %v301_v39 = vsel %vm266_vm2, %v293_v30, 0.0  ;;  %v265_v8 = vld [vmem:[#allocation2] sm:$0x1]  ;;  %v291_v14 = vld [vmem:[#allocation3] sm:$0x1]  ;;  %p1012_p11 = pnand %p1011_p8, %p1446_p9  ;;  %p1017_p10 = scmp.lt.s32.totalorder %s1354_s6, %s1015_s24 }
  0x45   : > { %888 = vmatprep.subr.bf16.mxu0 %v1129_v0  ;;  %900 = vmatprep.subr.bf16.mxu1 %v1129_v0  ;;  %v808_v40 = vunpack.c.h.bf16 %v811_v22  ;;  %v276_v41 = vsel %vm266_vm2, %v804_v26, 0.0  ;;  %v302_v42 = vadd.f32 %v301_v39, %v300_v38  ;;  %v303_v43 = vsel %vm266_vm2, %v294_v31, 0.0  ;;  %s1016_s25 = scalar_lea.vmem %s1015_s24, 32 }
  0x46   : > { %v273_v36 = vadd.f32 %v272_v27, %v271_v29  ;;  %v297_v45 = vmul.f32 %v804_v26, %v804_v26  ;;  %v305_v46 = vsel %vm266_vm2, %v295_v35, 0.0  ;;  %v278_v47 = vsel %vm266_vm2, %v807_v33, 0.0  ;;  %p1013_p13 = pneg %p1012_p11  ;;  %p1018_p12 = scmp.lt.s32.totalorder %s1016_s25, %s1010_s11 }
  0x47   : > { %v304_v48 = vadd.f32 %v303_v43, %v302_v42  ;;  %v298_v50 = vmul.f32 %v807_v33, %v807_v33  ;;  %v307_v51 = vsel %vm266_vm2, %v296_v37, 0.0  ;;  %v280_v52 = vsel %vm266_vm2, %v808_v40, 0.0 }
  0x48   : > { %890 = vmatpush3.bf16.msra.mxu0 %v889_v25  ;;  %902 = vmatpush3.bf16.msra.mxu1 %v889_v25  ;;  %v275_v44 = vadd.f32 %v274_v34, %v273_v36  ;;  %v299_v55 = vmul.f32 %v808_v40, %v808_v40  ;;  %v309_v56 = vsel %vm266_vm2, %v297_v45, 0.0  ;;  %p1019_p1 = por %p1018_p12, %p1017_p10 }
  0x49   : > { %891 = vmatprep.subr.bf16.mxu0 %v1129_v0  ;;  %903 = vmatprep.subr.bf16.mxu1 %v1129_v0  ;;  %v306_v53 = vadd.f32 %v305_v46, %v304_v48  ;;  %v311_v59 = vsel %vm266_vm2, %v298_v50, 0.0 }
  0x4a   : > { %v277_v49 = vadd.f32 %v276_v41, %v275_v44  ;;  %v313_v62 = vsel %vm266_vm2, %v299_v55, 0.0  ;;  %p1020_p3 = pnand %p1019_p1, %p1013_p13 }
  0x4b   : > { %v308_v57 = vadd.f32 %v307_v51, %v306_v53 }
  0x4c   : > { %893 = vmatpush3.bf16.msra.mxu0 %v892_v32  ;;  %905 = vmatpush3.bf16.msra.mxu1 %v892_v32  ;;  %v279_v54 = vadd.f32 %v278_v47, %v277_v49 }
  0x4d   : > { %872 = vmatprep.subr.mxu0 %v1130_v1  ;;  %877 = vmatprep.subr.mxu1 %v1130_v1  ;;  %v310_v60 = vadd.f32 %v309_v56, %v308_v57 }
  0x4e   : > { %v281_v58 = vadd.f32 %v280_v52, %v279_v54 }
  0x4f   : > { %v312_v63 = vadd.f32 %v311_v59, %v310_v60 }
  0x50   : > { %v282_v61 = vrot.slane %v281_v58, 4 }
  0x51   : > { %v314_v2 = vadd.f32 %v313_v62, %v312_v63 }
  0x52   : > { %v283_v0 = vadd.f32 %v282_v61, %v281_v58 }
  0x53   : > { %v315_v4 = vrot.slane %v314_v2, 4 }
  0x54   : > { %v284_v3 = vrot.slane %v283_v0, 2 }
  0x55   : > { %v316_v6 = vadd.f32 %v315_v4, %v314_v2 }
  0x56   : > { %v285_v5 = vadd.f32 %v284_v3, %v283_v0 }
  0x57   : > { %v317_v9 = vrot.slane %v316_v6, 2 }
  0x58   : > { %v286_v7 = vrot.slane %v285_v5, 1 }
  0x59   : > { %v318_v11 = vadd.f32 %v317_v9, %v316_v6 }
  0x5a   : > { %v287_v10 = vadd.f32 %v286_v7, %v285_v5 }
  0x5b   : > { %v319_v13 = vrot.slane %v318_v11, 1 }
  0x5c   : > { %v288_v12 = vadd.f32 %v287_v10, %v265_v8 }
  0x5d   : > { %v320_v15 = vadd.f32 %v319_v13, %v318_v11 }
  0x5e   : > { %290 = vst.msk [vmem:[#allocation2] sm:$0x1] %vm246_vm0, %v288_v12 }
  0x5f   : > { %v321_v16 = vadd.f32 %v320_v15, %v291_v14 }
  0x61   : > { %322 = vst.msk [vmem:[#allocation3] sm:$0x1] %vm246_vm0, %v321_v16 }
  0x65   : > { %v326_v17 = vld [vmem:[#allocation2] sm:$0x1] }
  0x66   : > { %851 = vmatmul.mubr.msk.f32.vlgmr.msra.gmra.mrb[0].mxu0 %vm266_vm2, %v326_v17 }
  0x67   : > { %874 = vmatprep.mubr.msk.f32.mxu0 %vm1131_vm1, %v1130_v1  ;;  %873 = vmatpush3.msra.mxu0 %v489_v19 }
  0x68   : > { %v408_v18 = vld [vmem:[#allocation3] sm:$0x1] }
  0x69   : > { %870 = vmatmul.mubr.msk.f32.vlgmr.msra.gmra.mrb[0].mxu1 %vm266_vm2, %v408_v18 }
  0x6a   : > { %879 = vmatprep.mubr.msk.f32.mxu1 %vm1131_vm1, %v1130_v1  ;;  %878 = vmatpush3.msra.mxu1 %v489_v19 }
 0x139   : > { %v404_v20 = vpop.f32.mrb[0].mxu0 }
 0x13a   : > { %v482_v21 = vmul.f32 0.001953125, %v404_v20  ;;  %v852_v22 = vpop.f32.mrb[1].mxu0 }
 0x13c   : > { %875 = vmatmul.mubr.msk.f32.vlgmr.msra.gmra.mrb[2].mxu0 %vm490_vm3, %v482_v21  ;;  %v484_v23 = vmul.f32 %v482_v21, %v482_v21  ;;  %v478_v24 = vpop.f32.mrb[0].mxu1 }
 0x13d   : > { %v483_v25 = vmul.f32 0.001953125, %v478_v24  ;;  %v871_v26 = vpop.f32.mrb[1].mxu1 }
 0x13f   : > { %v485_v1 = vsub.f32 %v483_v25, %v484_v23 }
 0x141   : > { %v486_v27 = vmax.f32 %v485_v1, 0.0 }
 0x143   : > { %v487_v28 = vadd.f32 1e-06, %v486_v27 }
 0x145   : > { %978 = vrsqrt.f32 %v487_v28 }
 0x14f   : > { %v979_v29 = vpop.eup %978 }
 0x150   : > { %880 = vmatmul.mubr.msk.f32.vlgmr.msra.gmra.mrb[2].mxu1 %vm490_vm3, %v979_v29 }
 0x20f   : > { %v560_v30 = vpop.f32.mrb[2].mxu0 }
 0x210   : > { %564 = vst.msk [vmem:[%s234_s14] sm:$0x1] %vm246_vm0, %v560_v30  ;;  %v876_v31 = vpop.f32.mrb[3].mxu0 }
 0x211   : > { %1023 = shalt.err (!%p1020_p3)
}
 0x212   : > { %s1024_s27 = scalar_lea.hbm %s1352_s8, 16  ;;  %s1028_s12 = scalar_lea.hbm %s1437_s3, 64 }
 0x213   : > { %p1025_p4 = scmp.ne.s32.totalorder %s1352_s8, %s1024_s27  ;;  %p1029_p0 = scmp.lt.u32.totalorder %s1352_s8, %s1437_s3 }
 0x214   : > { %p1030_p2 = scmp.lt.u32.totalorder %s1028_s12, %s1024_s27  ;;  %p1032_p8 = scmp.lt.u32.totalorder %s1024_s27, %s1352_s8 }
 0x215   : > { %p1026_p6 = pnand %p1025_p4, %p1446_p9 }
 0x216   : > { %p1031_p5 = por %p1030_p2, %p1029_p0 }
 0x217   : > { %p1027_p7 = pneg %p1026_p6 }
 0x218   : > { %p1033_p11 = por %p1032_p8, %p1031_p5 }
 0x21a   : > { %p1034_p13 = pnand %p1033_p11, %p1027_p7 }
 0x21c   : > { %1037 = shalt.err (!%p1034_p13)
}
 0x21d   : > { %908 = dma.vmem_to_hbm [thread:$0]  (%p1446_p9), %s1354_s6, 16, %s1352_s8, %s641_s9  }
 0x21e   : > { %s240_s7 = scalar_lea.vmem [#allocation8], %s1270_s22  ;;  %s1385_s25 = scalar_lea.hbm %s1438_s4, %s788_s13 }
 0x21f   : > { %s670_s11 = sshll.u32 %s240_s7, 4  ;;  %s645_s27 = scalar_lea.sflag [#allocation9], %s1270_s22  ;;  %s1387_s11 = int_to_ptr.vmem [resolvable:$true] %s670_s11 }
 0x220   : > { %s1038_s10 = scalar_lea.vmem %s1387_s11, 16  ;;  %s1133_s18 = smov [#allocation8]  }
 0x221   : > { %p1039_p10 = scmp.ne.s32.totalorder %s1387_s11, %s1038_s10  ;;  %s1042_s6 = sshll.u32 %s1133_s18, 4  ;;  %s1043_s6 = int_to_ptr.vmem [resolvable:$false] %s1042_s6 }
 0x222   : > { %s1044_s13 = scalar_lea.vmem %s1043_s6, 32  ;;  %p1045_p3 = scmp.lt.s32.totalorder %s1387_s11, %s1043_s6 }
 0x223   : > { %v635_v32 = vpop.f32.mrb[2].mxu1  ;;  %p1040_p12 = pnand %p1039_p10, %p1446_p9  ;;  %p1046_p4 = scmp.lt.s32.totalorder %s1044_s13, %s1038_s10 }
 0x224   : > { %639 = vst.msk [vmem:[%s240_s7] sm:$0x1] %vm246_vm0, %v635_v32  ;;  %v881_v33 = vpop.f32.mrb[3].mxu1 }
 0x225   : > { %p1041_p1 = pneg %p1040_p12  ;;  %p1047_p6 = por %p1046_p4, %p1045_p3 }
 0x227   : > { %p1048_p7 = pnand %p1047_p6, %p1041_p1 }
 0x229   : > { %1051 = shalt.err (!%p1048_p7)
}
 0x22a   : > { %s1052_s22 = scalar_lea.hbm %s1385_s25, 16  ;;  %s1056_s26 = scalar_lea.hbm %s1438_s4, 64 }
 0x22b   : > { %p1053_p0 = scmp.ne.s32.totalorder %s1385_s25, %s1052_s22  ;;  %p1057_p8 = scmp.lt.u32.totalorder %s1385_s25, %s1438_s4 }
 0x22c   : > { %p1058_p11 = scmp.lt.u32.totalorder %s1056_s26, %s1052_s22  ;;  %p1060_p10 = scmp.lt.u32.totalorder %s1052_s22, %s1385_s25 }
 0x22d   : > { %p1054_p2 = pnand %p1053_p0, %p1446_p9 }
 0x22e   : > { %p1059_p13 = por %p1058_p11, %p1057_p8 }
 0x22f   : > { %p1055_p5 = pneg %p1054_p2 }
 0x230   : > { %p1061_p12 = por %p1060_p10, %p1059_p13 }
 0x232   : > { %p1062_p1 = pnand %p1061_p12, %p1055_p5 }
 0x234   : > { %1065 = shalt.err (!%p1062_p1)
}
 0x235   : > { %909 = dma.vmem_to_hbm [thread:$0]  (%p1446_p9), %s1387_s11, 16, %s1385_s25, %s645_s27  }
 0x236 PF: > { %p924_p3 = scmp.ge.s32.totalorder %s1124_s20, 2  ;;  %s682_s5 = sand.u32 1, %s1104_s15  }
 0x237   : > { %p1447_p4 = scmp.ne.s32.totalorder %s1443_s30, 0  ;;  %s683_s7 = scalar_lea.sflag [#allocation6], %s682_s5 }
 0x239   : > { %p917_p6 = pnand %p924_p3, %p1447_p4 }
 0x23b   : > { %1095 = dma.done.wait (!%p917_p6), %s683_s7, 16  }
 0x23c   : > { %1097 = vsyncadd (!%p917_p6), %s683_s7, 4294967280  ;;  %s691_s21 = scalar_lea.sflag [#allocation9], %s682_s5 }
 0x23d   : > { %1099 = dma.done.wait (!%p917_p6), %s691_s21, 16  }
 0x23e   : > { %1101 = vsyncadd (!%p917_p6), %s691_s21, 4294967280  ;;  %s24_s20 = sadd.s32 1, %s1124_s20   ;;  %s1448_s15 = smov %s1108_s16 }
 0x23f   : > { %p21_p7 = scmp.ge.s32.totalorder %s24_s20, 6   ;;  %s1449_s16 = smov %s1112_s17 }
 0x240   : > { %s1450_s17 = smov %s1215_s29  ;;  %s1451_s18 = smov %s1120_s19 }
 0x241   : > { %s1452_s19 = smov %s1454_s23  ;;  %23 = sbr.rel (!%p21_p7) target bundleno = 8 (0x8), region = 102 }
 0x248   :  { %695 = vsyncpa [#allocation5], 1 }
 0x249   :  { %697 = vsyncpa [#allocation5 + $0x1], 1 }
 0x24a   :  { %698 = vsyncpa [#allocation6], 1 }
 0x24b   :  { %700 = vsyncpa [#allocation6 + $0x1], 1 }
 0x24c   :  { %701 = vsyncpa [#allocation9], 1 }
 0x24d   :  { %703 = vsyncpa [#allocation9 + $0x1], 1 }

</bundles_post_ra>
